<compile_context>
chip_gen: v5e
topology: v5e:2x2
jax: 0.10.0
libtpu: 0.0.40
codegen_flags: <defaults>
</compile_context>

<pallas_src>
import functools

import jax
import jax.numpy as jnp
from jax.experimental import pallas as pl
from jax.experimental.pallas import tpu as pltpu


# ---------------------------------------------------------------------------
# Kernel
# ---------------------------------------------------------------------------
def _critic_kernel(s_ref, a_ref, w1s_ref, w1a_ref, b1_ref,
                   w2_ref, b2_ref, w3_ref, b3_ref, o_ref, *, vec_out):
    # Layer 1: relu(concat(s, a) @ W1 + b1), concat realized as split matmuls.
    h1 = (jnp.dot(s_ref[...], w1s_ref[...], preferred_element_type=jnp.float32)
          + jnp.dot(a_ref[...], w1a_ref[...], preferred_element_type=jnp.float32)
          + b1_ref[...])
    h1 = jnp.maximum(h1, 0.0)

    # Layer 2: relu(h1 @ W2 + b2)
    h2 = (jnp.dot(h1, w2_ref[...], preferred_element_type=jnp.float32)
          + b2_ref[...])
    h2 = jnp.maximum(h2, 0.0)

    if vec_out:
        # output_size == 1: avoid a degenerate N=1 MXU matmul; VPU multiply +
        # lane (XLU) reduction instead.  w3_ref is (1, hidden).
        out = jnp.sum(h2 * w3_ref[...], axis=-1, keepdims=True) + b3_ref[...]
    else:
        out = (jnp.dot(h2, w3_ref[...], preferred_element_type=jnp.float32)
               + b3_ref[...])

    o_ref[...] = out.astype(o_ref.dtype)


# ---------------------------------------------------------------------------
# Params
# ---------------------------------------------------------------------------
def init_params(key, input_size, hidden_size, output_size):
    """Deterministic init mimicking nn.Linear's U(-1/sqrt(fan_in), 1/sqrt(fan_in))."""
    keys = jax.random.split(key, 6)

    def linear(kw, kb, fan_in, fan_out):
        bound = 1.0 / jnp.sqrt(fan_in)
        w = jax.random.uniform(kw, (fan_in, fan_out), jnp.float32, -bound, bound)
        b = jax.random.uniform(kb, (fan_out,), jnp.float32, -bound, bound)
        return w, b

    w1, b1 = linear(keys[0], keys[1], input_size, hidden_size)
    w2, b2 = linear(keys[2], keys[3], hidden_size, hidden_size)
    w3, b3 = linear(keys[4], keys[5], hidden_size, output_size)
    return {"w1": w1, "b1": b1, "w2": w2, "b2": b2, "w3": w3, "b3": b3}


def prepare_params(params, state_dim):
    """One-time re-layout hoisted out of the call path: split W1 rows for the concat,
    biases as (1, F) f32 rows, W3 stored as a (1, H) row vector when output_size == 1
    (VPU + lane-reduce path).  All weights kept in f32."""
    w1, b1 = params["w1"], params["b1"]
    w2, b2 = params["w2"], params["b2"]
    w3, b3 = params["w3"], params["b3"]
    out_size = w3.shape[1]

    prepared = {
        "w1_s": w1[:state_dim, :].astype(jnp.float32),
        "w1_a": w1[state_dim:, :].astype(jnp.float32),
        "b1": b1.reshape(1, -1).astype(jnp.float32),
        "w2": w2.astype(jnp.float32),
        "b2": b2.reshape(1, -1).astype(jnp.float32),
        "b3": b3.reshape(1, -1).astype(jnp.float32),
        "out_size": out_size,
    }
    if out_size == 1:
        prepared["w3"] = w3.reshape(1, -1).astype(jnp.float32)   # (1, hidden)
    else:
        prepared["w3"] = w3.astype(jnp.float32)                  # (hidden, out)
    return prepared


# ---------------------------------------------------------------------------
# Wrapper
# ---------------------------------------------------------------------------
def _round_up(x, m):
    return ((x + m - 1) // m) * m


def _full_spec(arr):
    zeros = (0,) * arr.ndim
    return pl.BlockSpec(arr.shape, lambda i, _z=zeros: _z)


def critic_forward(s, a, prepared, *, tile_b=2048):
    """s: (B, state_dim), a: (B, action_dim). Returns (B, output_size) float32."""
    B, ds = s.shape
    da = a.shape[1]
    out_size = prepared["out_size"]

    # Keep f32 data movement; no wrapper-side cast pass (no-op when already f32).
    s = s.astype(jnp.float32)
    a = a.astype(jnp.float32)

    # Batch tile: sublane-aligned (multiple of 8).  No padding of the batch: the grid
    # is cdiv(B, tb) and the partial tail block is handled by Pallas (tail garbage
    # rows are never stored to valid output rows).
    tb = min(tile_b, _round_up(B, 8))
    if B > 1024 and pl.cdiv(B, tb) < 2:
        # v7x megacore: give the ("parallel",) batch axis >= 2 steps to shard.
        tb = _round_up(pl.cdiv(B, 2), 8)
    grid = (pl.cdiv(B, tb),)

    w1_s, w1_a = prepared["w1_s"], prepared["w1_a"]
    b1, w2, b2 = prepared["b1"], prepared["w2"], prepared["b2"]
    w3, b3 = prepared["w3"], prepared["b3"]

    kernel = functools.partial(_critic_kernel, vec_out=(out_size == 1))

    out = pl.pallas_call(
        kernel,
        out_shape=jax.ShapeDtypeStruct((B, out_size), jnp.float32),
        grid=grid,
        in_specs=[
            pl.BlockSpec((tb, ds), lambda i: (i, 0)),   # s tile
            pl.BlockSpec((tb, da), lambda i: (i, 0)),   # a tile
            _full_spec(w1_s), _full_spec(w1_a), _full_spec(b1),
            _full_spec(w2), _full_spec(b2),
            _full_spec(w3), _full_spec(b3),
        ],
        out_specs=pl.BlockSpec((tb, out_size), lambda i: (i, 0)),
        compiler_params=pltpu.CompilerParams(
            dimension_semantics=("parallel",),          # shard batch over TCs (v7x)
            vmem_limit_bytes=48 * 1024 * 1024,          # raise vs 16/32 MiB scoped
        ),                                              # defaults, headroom on v7x
    )(s, a, w1_s, w1_a, b1, w2, b2, w3, b3)

    return out


# ---------------------------------------------------------------------------
# Reference
# ---------------------------------------------------------------------------
def critic_reference(s, a, params):
    x = jnp.concatenate([s, a], axis=1).astype(jnp.float32)
    h1 = jnp.maximum(
        jnp.dot(x, params["w1"], preferred_element_type=jnp.float32,
                precision=jax.lax.Precision.HIGHEST) + params["b1"], 0.0)
    h2 = jnp.maximum(
        jnp.dot(h1, params["w2"], preferred_element_type=jnp.float32,
                precision=jax.lax.Precision.HIGHEST) + params["b2"], 0.0)
    out = (jnp.dot(h2, params["w3"], preferred_element_type=jnp.float32,
                   precision=jax.lax.Precision.HIGHEST) + params["b3"])
    return out


# ---------------------------------------------------------------------------
if __name__ == "__main__":
    # Small shapes consistent with the module: state=12, action=4 -> input_size=16.
    batch = 8
    state_dim = 12
    action_dim = 4
    input_size = state_dim + action_dim
    hidden_size = 32
    output_size = 1

    key = jax.random.PRNGKey(0)
    k_s, k_a, k_p = jax.random.split(key, 3)
    s = jax.random.normal(k_s, (batch, state_dim), jnp.float32)
    a = jax.random.normal(k_a, (batch, action_dim), jnp.float32)
    params = init_params(k_p, input_size, hidden_size, output_size)

    prepared = prepare_params(params, state_dim)       # one-time re-layout
    out = critic_forward(s, a, prepared)
    out = jax.block_until_ready(out)
    assert out.shape == (batch, output_size)

    ref = critic_reference(s, a, params)
    assert jnp.allclose(out, ref, atol=5e-3, rtol=5e-3), "mismatch vs f32 reference"

    # Also exercise the multi-step grid with a non-divisible (partial tail) batch.
    b2 = 40
    s2 = jax.random.normal(jax.random.PRNGKey(1), (b2, state_dim), jnp.float32)
    a2 = jax.random.normal(jax.random.PRNGKey(2), (b2, action_dim), jnp.float32)
    out2 = jax.block_until_ready(critic_forward(s2, a2, prepared, tile_b=16))
    assert out2.shape == (b2, output_size)
    ref2 = critic_reference(s2, a2, params)
    assert jnp.allclose(out2, ref2, atol=5e-3, rtol=5e-3), "mismatch on tiled batch"

    print("KERNEL_OK")
</pallas_src>

<mosaic_0001>
module attributes {stable_mosaic.version = 11 : i64} {
  func.func @_critic_kernel(%arg0: i32, %arg1: memref<8x12xf32, #tpu.memory_space<vmem>>, %arg2: memref<8x4xf32, #tpu.memory_space<vmem>>, %arg3: memref<12x32xf32, #tpu.memory_space<vmem>>, %arg4: memref<4x32xf32, #tpu.memory_space<vmem>>, %arg5: memref<1x32xf32, #tpu.memory_space<vmem>>, %arg6: memref<32x32xf32, #tpu.memory_space<vmem>>, %arg7: memref<1x32xf32, #tpu.memory_space<vmem>>, %arg8: memref<1x32xf32, #tpu.memory_space<vmem>>, %arg9: memref<1x1xf32, #tpu.memory_space<vmem>>, %arg10: memref<8x1xf32, #tpu.memory_space<vmem>>) attributes {dimension_semantics = [#tpu.dimension_semantics<parallel>], iteration_bounds = array<i64: 1>, scalar_prefetch = 0 : i64, scratch_operands = 0 : i64, tpu.core_type = #tpu.core_type<tc>, window_params = [{transform_indices = @transform_0, window_bounds = array<i64: 8, 12>}, {transform_indices = @transform_1, window_bounds = array<i64: 8, 4>}, {pipeline_mode = #tpu.pipeline_mode<synchronous>, transform_indices = @transform_2, window_bounds = array<i64: 12, 32>}, {pipeline_mode = #tpu.pipeline_mode<synchronous>, transform_indices = @transform_3, window_bounds = array<i64: 4, 32>}, {pipeline_mode = #tpu.pipeline_mode<synchronous>, transform_indices = @transform_4, window_bounds = array<i64: 1, 32>}, {pipeline_mode = #tpu.pipeline_mode<synchronous>, transform_indices = @transform_5, window_bounds = array<i64: 32, 32>}, {pipeline_mode = #tpu.pipeline_mode<synchronous>, transform_indices = @transform_6, window_bounds = array<i64: 1, 32>}, {pipeline_mode = #tpu.pipeline_mode<synchronous>, transform_indices = @transform_7, window_bounds = array<i64: 1, 32>}, {pipeline_mode = #tpu.pipeline_mode<synchronous>, transform_indices = @transform_8, window_bounds = array<i64: 1, 1>}, {transform_indices = @transform_9, window_bounds = array<i64: 8, 1>}]} {
    %c0 = arith.constant 0 : index
    %c0_0 = arith.constant 0 : index
    %0 = vector.load %arg1[%c0, %c0_0] : memref<8x12xf32, #tpu.memory_space<vmem>>, vector<8x12xf32>
    %c0_1 = arith.constant 0 : index
    %c0_2 = arith.constant 0 : index
    %1 = vector.load %arg3[%c0_1, %c0_2] : memref<12x32xf32, #tpu.memory_space<vmem>>, vector<12x32xf32>
    %cst = arith.constant dense<0.000000e+00> : vector<8x32xf32>
    %2 = tpu.matmul %0, %1, %cst {dimension_numbers = #tpu.dot_dimension_numbers<[1], [0], [0], [1], [0, 0, 1, 1], [], []>} : vector<8x12xf32>, vector<12x32xf32>, vector<8x32xf32> -> vector<8x32xf32>
    %c0_3 = arith.constant 0 : index
    %c0_4 = arith.constant 0 : index
    %3 = vector.load %arg2[%c0_3, %c0_4] : memref<8x4xf32, #tpu.memory_space<vmem>>, vector<8x4xf32>
    %c0_5 = arith.constant 0 : index
    %c0_6 = arith.constant 0 : index
    %4 = vector.load %arg4[%c0_5, %c0_6] : memref<4x32xf32, #tpu.memory_space<vmem>>, vector<4x32xf32>
    %cst_7 = arith.constant dense<0.000000e+00> : vector<8x32xf32>
    %5 = tpu.matmul %3, %4, %cst_7 {dimension_numbers = #tpu.dot_dimension_numbers<[1], [0], [0], [1], [0, 0, 1, 1], [], []>} : vector<8x4xf32>, vector<4x32xf32>, vector<8x32xf32> -> vector<8x32xf32>
    %6 = arith.addf %2, %5 : vector<8x32xf32>
    %c0_8 = arith.constant 0 : index
    %c0_9 = arith.constant 0 : index
    %7 = vector.load %arg5[%c0_8, %c0_9] : memref<1x32xf32, #tpu.memory_space<vmem>>, vector<1x32xf32>
    %8 = vector.broadcast %7 : vector<1x32xf32> to vector<8x32xf32>
    %9 = arith.addf %6, %8 : vector<8x32xf32>
    %cst_10 = arith.constant 0.000000e+00 : f32
    %10 = vector.broadcast %cst_10 : f32 to vector<8x32xf32>
    %11 = arith.maximumf %9, %10 : vector<8x32xf32>
    %c0_11 = arith.constant 0 : index
    %c0_12 = arith.constant 0 : index
    %12 = vector.load %arg6[%c0_11, %c0_12] : memref<32x32xf32, #tpu.memory_space<vmem>>, vector<32x32xf32>
    %cst_13 = arith.constant dense<0.000000e+00> : vector<8x32xf32>
    %13 = tpu.matmul %11, %12, %cst_13 {dimension_numbers = #tpu.dot_dimension_numbers<[1], [0], [0], [1], [0, 0, 1, 1], [], []>} : vector<8x32xf32>, vector<32x32xf32>, vector<8x32xf32> -> vector<8x32xf32>
    %c0_14 = arith.constant 0 : index
    %c0_15 = arith.constant 0 : index
    %14 = vector.load %arg7[%c0_14, %c0_15] : memref<1x32xf32, #tpu.memory_space<vmem>>, vector<1x32xf32>
    %15 = vector.broadcast %14 : vector<1x32xf32> to vector<8x32xf32>
    %16 = arith.addf %13, %15 : vector<8x32xf32>
    %cst_16 = arith.constant 0.000000e+00 : f32
    %17 = vector.broadcast %cst_16 : f32 to vector<8x32xf32>
    %18 = arith.maximumf %16, %17 : vector<8x32xf32>
    %c0_17 = arith.constant 0 : index
    %c0_18 = arith.constant 0 : index
    %19 = vector.load %arg8[%c0_17, %c0_18] : memref<1x32xf32, #tpu.memory_space<vmem>>, vector<1x32xf32>
    %20 = vector.broadcast %19 : vector<1x32xf32> to vector<8x32xf32>
    %21 = arith.mulf %18, %20 : vector<8x32xf32>
    %cst_19 = arith.constant dense<0.000000e+00> : vector<8xf32>
    %22 = vector.multi_reduction <add>, %21, %cst_19 [1] : vector<8x32xf32> to vector<8xf32>
    %23 = vector.shape_cast %22 : vector<8xf32> to vector<8x1xf32>
    %c0_20 = arith.constant 0 : index
    %c0_21 = arith.constant 0 : index
    %24 = vector.load %arg9[%c0_20, %c0_21] : memref<1x1xf32, #tpu.memory_space<vmem>>, vector<1x1xf32>
    %25 = vector.broadcast %24 : vector<1x1xf32> to vector<8x1xf32>
    %26 = arith.addf %23, %25 : vector<8x1xf32>
    %c0_22 = arith.constant 0 : index
    %c0_23 = arith.constant 0 : index
    %27 = vector.load %arg10[%c0_22, %c0_23] : memref<8x1xf32, #tpu.memory_space<vmem>>, vector<8x1xf32>
    tpu.vector_store %arg10[%c0_22, %c0_23], %26 {strides = array<i32>} : memref<8x1xf32, #tpu.memory_space<vmem>>, vector<8x1xf32>,
    return
  }
  func.func @transform_0(%arg0: i32) -> (i32, i32) {
    %c0_i32 = arith.constant 0 : i32
    %c0_i32_0 = arith.constant 0 : i32
    return %arg0, %c0_i32 : i32, i32
  }
  func.func @transform_1(%arg0: i32) -> (i32, i32) {
    %c0_i32 = arith.constant 0 : i32
    %c0_i32_0 = arith.constant 0 : i32
    return %arg0, %c0_i32 : i32, i32
  }
  func.func @transform_2(%arg0: i32) -> (i32, i32) {
    %c0_i32 = arith.constant 0 : i32
    %c0_i32_0 = arith.constant 0 : i32
    %c0_i32_1 = arith.constant 0 : i32
    return %c0_i32, %c0_i32_0 : i32, i32
  }
  func.func @transform_3(%arg0: i32) -> (i32, i32) {
    %c0_i32 = arith.constant 0 : i32
    %c0_i32_0 = arith.constant 0 : i32
    %c0_i32_1 = arith.constant 0 : i32
    return %c0_i32, %c0_i32_0 : i32, i32
  }
  func.func @transform_4(%arg0: i32) -> (i32, i32) {
    %c0_i32 = arith.constant 0 : i32
    %c0_i32_0 = arith.constant 0 : i32
    %c0_i32_1 = arith.constant 0 : i32
    return %c0_i32, %c0_i32_0 : i32, i32
  }
  func.func @transform_5(%arg0: i32) -> (i32, i32) {
    %c0_i32 = arith.constant 0 : i32
    %c0_i32_0 = arith.constant 0 : i32
    %c0_i32_1 = arith.constant 0 : i32
    return %c0_i32, %c0_i32_0 : i32, i32
  }
  func.func @transform_6(%arg0: i32) -> (i32, i32) {
    %c0_i32 = arith.constant 0 : i32
    %c0_i32_0 = arith.constant 0 : i32
    %c0_i32_1 = arith.constant 0 : i32
    return %c0_i32, %c0_i32_0 : i32, i32
  }
  func.func @transform_7(%arg0: i32) -> (i32, i32) {
    %c0_i32 = arith.constant 0 : i32
    %c0_i32_0 = arith.constant 0 : i32
    %c0_i32_1 = arith.constant 0 : i32
    return %c0_i32, %c0_i32_0 : i32, i32
  }
  func.func @transform_8(%arg0: i32) -> (i32, i32) {
    %c0_i32 = arith.constant 0 : i32
    %c0_i32_0 = arith.constant 0 : i32
    %c0_i32_1 = arith.constant 0 : i32
    return %c0_i32, %c0_i32_0 : i32, i32
  }
  func.func @transform_9(%arg0: i32) -> (i32, i32) {
    %c0_i32 = arith.constant 0 : i32
    %c0_i32_0 = arith.constant 0 : i32
    return %arg0, %c0_i32 : i32, i32
  }
}

</mosaic_0001>

<bundles_post_ra>
// kernel: tpu_custom_call.1
= control target key start
LH: loop header
LB: loop body
LE: loop exit
PB: predicated region body
PF: predicated region fallthrough
CT: control target
= control target key end

     0   :  { %s335_s0 = inlined_call_operand.vmem [shape: f32[8,12], index: 0, kind: input, shape index: {}]   ;;  %s336_s1 = inlined_call_operand.vmem [shape: f32[8,4], index: 1, kind: input, shape index: {}]   ;;  %s337_s2 = inlined_call_operand.hbm [shape: f32[12,32], index: 2, kind: input, shape index: {}]   ;;  %s338_s3 = inlined_call_operand.vmem [shape: f32[4,32], index: 3, kind: input, shape index: {}]   ;;  %s339_s4 = inlined_call_operand.vmem [shape: f32[1,32], index: 4, kind: input, shape index: {}]   ;;  %s340_s5 = inlined_call_operand.hbm [shape: f32[32,32], index: 5, kind: input, shape index: {}]   ;;  %s341_s6 = inlined_call_operand.vmem [shape: f32[1,32], index: 6, kind: input, shape index: {}]   ;;  %s342_s7 = inlined_call_operand.vmem [shape: f32[1,32], index: 7, kind: input, shape index: {}]   ;;  %s343_s8 = inlined_call_operand.<no memory space> [shape: f32[1,1], index: 8, kind: input, shape index: {}]   ;;  %s344_s9 = inlined_call_operand.vmem [shape: f32[8,1], index: 9, kind: output, shape index: {}]  }
   0x1   :  { %v14_v0 = vstv %s343_s8 }
   0x2   :  { %15 = vst [vmem:[#allocation2] sm:$0x1] %v14_v0 }
   0x3   :  { %16 = vsyncpa [#allocation4], 0  ;;  %s26_s13 = sshll.u32 %s337_s2, 4  ;;  %s27_s13 = int_to_ptr.hbm [resolvable:$true] %s26_s13 }
   0x4   :  { %17 = vsyncpa [#allocation6], 0  ;;  %s251_s14 = smov [#allocation3]   ;;  %s43_s18 = sshll.u32 %s340_s5, 4  ;;  %s44_s18 = int_to_ptr.hbm [resolvable:$true] %s43_s18 }
   0x5   :  { %s28_s15 = sshll.u32 %s251_s14, 4  ;;  %s252_s19 = smov 128   ;;  %s29_s15 = int_to_ptr.vmem [resolvable:$true] %s28_s15 }
   0x6   :  { %s253_s20 = smov 8   ;;  %s254_s8 = smov [#allocation5]  }
   0x7   :  { %34 = dma.hbm_to_vmem [thread:$0]  %s27_s13, 256, %s29_s15, [#allocation4], %s252_s19, %s252_s19, %s253_s20  }
   0x8   :  { %s45_s21 = sshll.u32 %s254_s8, 4  ;;  %s46_s21 = int_to_ptr.vmem [resolvable:$true] %s45_s21 }
   0x9   :  { %51 = dma.hbm_to_vmem [thread:$0]  %s44_s18, 512, %s46_s21, [#allocation6], %s252_s19, %s252_s19, %s253_s20  }
   0xa   :  { %247 = dma.done.wait [#allocation4], 256  }
   0xb   :  { %248 = vsyncadd [#allocation4], 4294967040 }
   0xc   :  { %249 = dma.done.wait [#allocation6], 512  }
   0xd   :  { %250 = vsyncadd [#allocation6], 4294966784  ;;  %vm75_vm0 = vcmask 1043456   ;;  %vm71_vm1 = vcmask 31744   ;;  %v68_v1 = vld [vmem:[#allocation3 + $0x8] sm:$0xf] }
   0xe   :  { %v70_v2 = vld [vmem:[%s338_s3] sm:$0xf]  ;;  %188 = vmatpush.msk.msra.mxu1 %vm75_vm0, %v68_v1  ;;  %vm99_vm2 = vcmask 97280   ;;  %v135_v6 = vld [vmem:[#allocation5 + $0x18] sm:$0xff]  ;;  %v132_v9 = vld [vmem:[#allocation5] sm:$0xff]  ;;  %vm140_vm3 = vcmask 261120  }
   0xf   :  { %v67_v3 = vld [vmem:[#allocation3] sm:$0xff]  ;;  %186 = vmatpush.msk.msra.mxu0 %vm75_vm0, %v70_v2  ;;  %156 = vmatpush.msra.mxu2 %v135_v6  ;;  %v133_v8 = vld [vmem:[#allocation5 + $0x8] sm:$0xff]  ;;  %vm178_vm4 = vcmask 7168  }
  0x10   :  { %v69_v4 = vld [vmem:[%s336_s1] sm:$0xff]  ;;  %121 = vmatpush.msra.mxu1 %v67_v3 }
  0x11   :  { %v66_v5 = vld [vmem:[%s335_s0] sm:$0xff]  ;;  %187 = vmatmul.msk.f32.vlgmr.msra.gmra.mxu0 %vm71_vm1, %v69_v4 }
  0x12   :  { %189 = vmatmul.msk.f32.vlgmr.msra.gmra.mxu1 %vm99_vm2, %v66_v5  ;;  %v134_v7 = vld [vmem:[#allocation5 + $0x10] sm:$0xff]  ;;  %v195_v11 = vld [vmem:[%s339_s4] ss:$0 sm:$0xff] }
  0x13   :  { %157 = vmatpush.msra.mxu2 %v134_v7  ;;  %v196_v16 = vld [vmem:[%s341_s6] ss:$0 sm:$0xff] }
  0x14   :  { %v197_v19 = vld [vmem:[%s342_s7] ss:$0 sm:$0xff] }
  0x15   :  { %158 = vmatpush.msra.mxu2 %v133_v8  ;;  %v198_v23 = vld [vmem:[#allocation2] ss:$0 sm:$0xff] }
  0x17   :  { %159 = vmatpush.msra.mxu2 %v132_v9 }
  0x8e   :  { %v96_v10 = vpop.f32.mrf.mxu0 }
  0x8f   :  { %v123_v12 = vpop.f32.mrf.mxu1 }
  0x90   :  { %v124_v13 = vadd.f32 %v123_v12, %v96_v10 }
  0x92   :  { %v130_v14 = vadd.f32 %v195_v11, %v124_v13 }
  0x94   :  { %v131_v15 = vmax.f32 %v130_v14, 0.0 }
  0x96   :  { %190 = vmatmul.msk.f32.vlgmr.msra.gmra.mxu2 %vm140_vm3, %v131_v15 }
 0x119   :  { %v161_v17 = vpop.f32.mrf.mxu2 }
 0x11a   :  { %v162_v18 = vadd.f32 %v196_v16, %v161_v17 }
 0x11c   :  { %v164_v20 = vmax.f32 %v162_v18, 0.0 }
 0x11e   :  { %v169_v21 = vmul.f32 %v197_v19, %v164_v20 }
 0x120   :  { %v170_v22 = vsel %vm140_vm3, %v169_v21, 0.0 }
 0x121   :  { %171 = vadd.xlane.f32.xlu0 %v170_v22 }
 0x194   :  { %v172_v24 = vpop.xlane.xlu0 %171 }
 0x195   :  { %v177_v25 = vadd.f32 %v198_v23, %v172_v24 }
 0x197   :  { %179 = vst.msk [vmem:[%s344_s9] sm:$0xff] %vm178_vm4, %v177_v25 }
 0x198   :  { %184 = vsyncpa [#allocation4], 1 }
 0x199   :  { %185 = vsyncpa [#allocation6], 1 }

</bundles_post_ra>
